<compile_context>
chip_gen: v6e
topology: v6e:2x2x1
jax: 0.10.0
libtpu: 0.0.40
codegen_flags: <defaults>
</compile_context>

<pallas_src>
import jax
import jax.numpy as jnp
from jax import lax
from jax.experimental import pallas as pl
from jax.experimental.pallas import tpu as pltpu


def _make_single_kernel(cdt):
    """Whole (bB, H, W) image block per grid step - no halo inputs."""

    def kernel(x_ref, o_ref):
        x = x_ref[...].astype(cdt)                       # (bB, H, W)
        bB, H, W = x.shape
        zrow = jnp.zeros((bB, 1, W), cdt)
        zcol = jnp.zeros((bB, H, 1), cdt)

        up = jnp.concatenate([zrow, x[:, : H - 1, :]], axis=1)    # x[i-1,j], zero pad
        down = jnp.concatenate([x[:, 1:, :], zrow], axis=1)       # x[i+1,j], zero pad

        def left(a):                                              # a[:, j-1], zero pad
            return jnp.concatenate([zcol, a[:, :, : W - 1]], axis=2)

        def right(a):                                             # a[:, j+1], zero pad
            return jnp.concatenate([a[:, :, 1:], zcol], axis=2)

        sv = up + (x + x) + down                 # vertical [1,2,1]
        gx = jnp.abs(right(sv) - left(sv))       # horizontal [-1,0,1]
        dv = up - down                           # vertical [1,0,-1]
        gy = jnp.abs(left(dv) + (dv + dv) + right(dv))   # horizontal [1,2,1]

        o_ref[...] = (gx + gy).astype(o_ref.dtype)

    return kernel


def _make_tiled_kernel(cdt, H, tH):
    """(1, tH, W) row tile plus two thin 8-row halo blocks (above / below)."""

    def kernel(x_ref, top_ref, bot_ref, o_ref):
        r = pl.program_id(1)
        x = x_ref[0].astype(cdt)                         # (tH, W)
        W = x.shape[-1]
        zero = jnp.zeros((), cdt)

        # Ragged last tile: zero rows past the true image height (their outputs are
        # dropped by the masked boundary store, but row H-1 must see a zero below it).
        if H % tH != 0:
            row = lax.broadcasted_iota(jnp.int32, (tH, 1), 0)
            x = jnp.where(r * tH + row < H, x, zero)

        top = top_ref[0, 7:8, :].astype(cdt)             # global row r*tH - 1
        bot = bot_ref[0, 0:1, :].astype(cdt)             # global row r*tH + tH
        top = jnp.where(r > 0, top, zero)                # conv zero padding at borders
        bot = jnp.where((r + 1) * tH < H, bot, zero)

        up = jnp.concatenate([top, x[: tH - 1, :]], axis=0)     # x[i-1,j]
        down = jnp.concatenate([x[1:, :], bot], axis=0)         # x[i+1,j]

        zcol = jnp.zeros((tH, 1), cdt)

        def left(a):
            return jnp.concatenate([zcol, a[:, : W - 1]], axis=1)

        def right(a):
            return jnp.concatenate([a[:, 1:], zcol], axis=1)

        sv = up + (x + x) + down
        gx = jnp.abs(right(sv) - left(sv))
        dv = up - down
        gy = jnp.abs(left(dv) + (dv + dv) + right(dv))

        o_ref[0] = (gx + gy).astype(o_ref.dtype)

    return kernel


def sobelxy(x, *, target_tile_bytes=3 << 20, max_tile_rows=None,
            vmem_limit_bytes=48 << 20):
    """|Sobel_x(x)| + |Sobel_y(x)| with 3x3 kernels and zero padding=1.

    x: (N, C, H, W).  The PyTorch module's conv weight is (1, 1, 3, 3) (C == 1);
    channels are folded into the batch axis and filtered independently.
    """
    N, C, H, W = x.shape
    B = N * C
    x2 = x.reshape(B, H, W)                  # leading-dim reshape: no data movement

    cdt = jnp.bfloat16 if x.dtype == jnp.bfloat16 else jnp.float32
    bpe = jnp.dtype(cdt).itemsize

    # Per-step tile budget (rows), multiple of 8 (sublane granularity).
    rows_cap = max(8, (target_tile_bytes // max(bpe * W, 1)) // 8 * 8)
    if max_tile_rows is not None:
        rows_cap = max(8, min(rows_cap, (max_tile_rows // 8) * 8))

    if H <= rows_cap:
        # ---- Fast path: whole image(s) per grid step, no halo inputs. ----------
        bB = max(1, min(B, rows_cap // max(H, 1)))
        if B >= 2:
            bB = min(bB, pl.cdiv(B, 2))      # keep >= 2 steps so v7x uses both TCs
        grid = (pl.cdiv(B, bB),)
        out = pl.pallas_call(
            _make_single_kernel(cdt),
            out_shape=jax.ShapeDtypeStruct((B, H, W), x.dtype),
            grid_spec=pltpu.PrefetchScalarGridSpec(
                num_scalar_prefetch=0,
                grid=grid,
                in_specs=[pl.BlockSpec((bB, H, W), lambda b: (b, 0, 0))],
                out_specs=pl.BlockSpec((bB, H, W), lambda b: (b, 0, 0))),
            compiler_params=pltpu.CompilerParams(
                dimension_semantics=("parallel",),
                vmem_limit_bytes=vmem_limit_bytes),
        )(x2)
    else:
        # ---- Row-tiled path: big tiles + thin halo blocks, ragged tail masked. --
        tH = rows_cap                        # multiple of 8; need not divide H
        nH = pl.cdiv(H, tH)
        hb = tH // 8                         # halo-block stride, in 8-row blocks
        n_hblk = pl.cdiv(H, 8)               # number of 8-row halo blocks along H
        out = pl.pallas_call(
            _make_tiled_kernel(cdt, H, tH),
            out_shape=jax.ShapeDtypeStruct((B, H, W), x.dtype),
            grid_spec=pltpu.PrefetchScalarGridSpec(
                num_scalar_prefetch=0,
                grid=(B, nH),
                in_specs=[
                    # main (tH, W) row tile
                    pl.BlockSpec((1, tH, W), lambda b, r: (b, r, 0)),
                    # 8-row block just above the tile (clamped at the top border)
                    pl.BlockSpec((1, 8, W),
                                 lambda b, r: (b, jnp.maximum(r * hb - 1, 0), 0)),
                    # 8-row block just below the tile (clamped at the bottom border)
                    pl.BlockSpec((1, 8, W),
                                 lambda b, r: (b, jnp.minimum((r + 1) * hb,
                                                              n_hblk - 1), 0)),
                ],
                out_specs=pl.BlockSpec((1, tH, W), lambda b, r: (b, r, 0))),
            compiler_params=pltpu.CompilerParams(
                dimension_semantics=("parallel", "parallel"),
                vmem_limit_bytes=vmem_limit_bytes),
        )(x2, x2, x2)

    return out.reshape(N, C, H, W)


def _reference_sobelxy(x):
    """Pure-JAX reference with explicit zero padding (matches F.conv2d, padding=1)."""
    xf = x.astype(jnp.float32)
    _, _, H, W = xf.shape
    xp = jnp.pad(xf, ((0, 0), (0, 0), (1, 1), (1, 1)))

    def win(di, dj):
        return xp[:, :, 1 + di:1 + di + H, 1 + dj:1 + dj + W]

    gx = (-win(-1, -1) + win(-1, 1)
          - 2.0 * win(0, -1) + 2.0 * win(0, 1)
          - win(1, -1) + win(1, 1))
    gy = (win(-1, -1) + 2.0 * win(-1, 0) + win(-1, 1)
          - win(1, -1) - 2.0 * win(1, 0) - win(1, 1))
    return (jnp.abs(gx) + jnp.abs(gy)).astype(x.dtype)


if __name__ == "__main__":
    key = jax.random.PRNGKey(0)
    keys = jax.random.split(key, 5)

    cases = []

    # 1) single-tile fast path, H multiple of 8
    x1 = jax.random.normal(keys[0], (2, 1, 16, 128), dtype=jnp.float32)
    cases.append((x1, sobelxy(x1)))

    # 2) single-tile fast path, H not a multiple of 8 (no host pad needed)
    x2 = jax.random.normal(keys[1], (2, 1, 20, 128), dtype=jnp.float32)
    cases.append((x2, sobelxy(x2)))

    # 3) row-tiled path, H divisible by the tile (in-kernel halo between tiles)
    x3 = jax.random.normal(keys[2], (1, 1, 32, 128), dtype=jnp.float32)
    cases.append((x3, sobelxy(x3, max_tile_rows=16)))

    # 4) row-tiled path with a ragged last tile (H % tH != 0)
    x4 = jax.random.normal(keys[3], (1, 1, 24, 128), dtype=jnp.float32)
    cases.append((x4, sobelxy(x4, max_tile_rows=16)))

    # 5) row-tiled path with H not a multiple of 8 (partial main + halo blocks)
    x5 = jax.random.normal(keys[4], (2, 1, 20, 128), dtype=jnp.float32)
    cases.append((x5, sobelxy(x5, max_tile_rows=8)))

    for xi, yi in cases:
        yi = jax.block_until_ready(yi)
        ref = _reference_sobelxy(xi)
        err = float(jnp.max(jnp.abs(yi.astype(jnp.float32) - ref.astype(jnp.float32))))
        if not (yi.shape == xi.shape and err <= 1e-4):
            raise AssertionError(f"Sobel mismatch: shape={yi.shape} max_abs_err={err}")

    print("KERNEL_OK")
</pallas_src>

<mosaic_0001>
module attributes {stable_mosaic.version = 11 : i64} {
  func.func @kernel(%arg0: i32, %arg1: memref<1x16x128xf32, #tpu.memory_space<vmem>>, %arg2: memref<1x16x128xf32, #tpu.memory_space<vmem>>) attributes {dimension_semantics = [#tpu.dimension_semantics<parallel>], iteration_bounds = array<i64: 2>, scalar_prefetch = 0 : i64, scratch_operands = 0 : i64, tpu.core_type = #tpu.core_type<tc>, window_params = [{transform_indices = @transform_0, window_bounds = array<i64: 1, 16, 128>}, {transform_indices = @transform_1, window_bounds = array<i64: 1, 16, 128>}]} {
    %c0 = arith.constant 0 : index
    %c0_0 = arith.constant 0 : index
    %c0_1 = arith.constant 0 : index
    %0 = vector.load %arg1[%c0, %c0_0, %c0_1] : memref<1x16x128xf32, #tpu.memory_space<vmem>>, vector<1x16x128xf32>
    %cst = arith.constant 0.000000e+00 : f32
    %1 = vector.broadcast %cst : f32 to vector<1x1x128xf32>
    %cst_2 = arith.constant 0.000000e+00 : f32
    %2 = vector.broadcast %cst_2 : f32 to vector<1x16x1xf32>
    %3 = vector.extract_strided_slice %0 {offsets = [0, 0, 0], sizes = [1, 15, 128], strides = [1, 1, 1]} : vector<1x16x128xf32> to vector<1x15x128xf32>
    %4 = tpu.concatenate %1, %3 in 1 : vector<1x1x128xf32>, vector<1x15x128xf32> -> vector<1x16x128xf32>
    %5 = vector.extract_strided_slice %0 {offsets = [0, 1, 0], sizes = [1, 15, 128], strides = [1, 1, 1]} : vector<1x16x128xf32> to vector<1x15x128xf32>
    %6 = tpu.concatenate %5, %1 in 1 : vector<1x15x128xf32>, vector<1x1x128xf32> -> vector<1x16x128xf32>
    %7 = arith.addf %0, %0 : vector<1x16x128xf32>
    %8 = arith.addf %4, %7 : vector<1x16x128xf32>
    %9 = arith.addf %8, %6 : vector<1x16x128xf32>
    %10 = vector.extract_strided_slice %9 {offsets = [0, 0, 1], sizes = [1, 16, 127], strides = [1, 1, 1]} : vector<1x16x128xf32> to vector<1x16x127xf32>
    %11 = tpu.concatenate %10, %2 in 2 : vector<1x16x127xf32>, vector<1x16x1xf32> -> vector<1x16x128xf32>
    %12 = vector.extract_strided_slice %9 {offsets = [0, 0, 0], sizes = [1, 16, 127], strides = [1, 1, 1]} : vector<1x16x128xf32> to vector<1x16x127xf32>
    %13 = tpu.concatenate %2, %12 in 2 : vector<1x16x1xf32>, vector<1x16x127xf32> -> vector<1x16x128xf32>
    %14 = arith.subf %11, %13 : vector<1x16x128xf32>
    %15 = math.absf %14 : vector<1x16x128xf32>
    %16 = arith.subf %4, %6 : vector<1x16x128xf32>
    %17 = vector.extract_strided_slice %16 {offsets = [0, 0, 0], sizes = [1, 16, 127], strides = [1, 1, 1]} : vector<1x16x128xf32> to vector<1x16x127xf32>
    %18 = tpu.concatenate %2, %17 in 2 : vector<1x16x1xf32>, vector<1x16x127xf32> -> vector<1x16x128xf32>
    %19 = arith.addf %16, %16 : vector<1x16x128xf32>
    %20 = arith.addf %18, %19 : vector<1x16x128xf32>
    %21 = vector.extract_strided_slice %16 {offsets = [0, 0, 1], sizes = [1, 16, 127], strides = [1, 1, 1]} : vector<1x16x128xf32> to vector<1x16x127xf32>
    %22 = tpu.concatenate %21, %2 in 2 : vector<1x16x127xf32>, vector<1x16x1xf32> -> vector<1x16x128xf32>
    %23 = arith.addf %20, %22 : vector<1x16x128xf32>
    %24 = math.absf %23 : vector<1x16x128xf32>
    %25 = arith.addf %15, %24 : vector<1x16x128xf32>
    %c0_3 = arith.constant 0 : index
    %c0_4 = arith.constant 0 : index
    %c0_5 = arith.constant 0 : index
    %26 = vector.load %arg2[%c0_3, %c0_4, %c0_5] : memref<1x16x128xf32, #tpu.memory_space<vmem>>, vector<1x16x128xf32>
    tpu.vector_store %arg2[%c0_3, %c0_4, %c0_5], %25 {strides = array<i32>} : memref<1x16x128xf32, #tpu.memory_space<vmem>>, vector<1x16x128xf32>,
    return
  }
  func.func @transform_0(%arg0: i32) -> (i32, i32, i32) {
    %c0_i32 = arith.constant 0 : i32
    %c0_i32_0 = arith.constant 0 : i32
    %c0_i32_1 = arith.constant 0 : i32
    return %arg0, %c0_i32, %c0_i32_0 : i32, i32, i32
  }
  func.func @transform_1(%arg0: i32) -> (i32, i32, i32) {
    %c0_i32 = arith.constant 0 : i32
    %c0_i32_0 = arith.constant 0 : i32
    %c0_i32_1 = arith.constant 0 : i32
    return %arg0, %c0_i32, %c0_i32_0 : i32, i32, i32
  }
}

</mosaic_0001>

<bundles_post_ra>
// kernel: tpu_custom_call.1
= control target key start
LH: loop header
LB: loop body
LE: loop exit
PB: predicated region body
PF: predicated region fallthrough
CT: control target
= control target key end

     0   :  { %6 = vsyncpa [#allocation3], 0  ;;  %s644_s0 = inlined_call_operand.hbm [shape: f32[2,16,128], index: 0, kind: input, shape index: {}]   ;;  %s645_s1 = inlined_call_operand.hbm [shape: f32[2,16,128], index: 1, kind: output, shape index: {}]  }
   0x1   :  { %8 = vsyncpa [#allocation3 + $0x1], 0 }
   0x2   :  { %9 = vsyncpa [#allocation4], 0 }
   0x3   :  { %11 = vsyncpa [#allocation4 + $0x1], 0  ;;  %s482_s6 = smov 0   ;;  %s484_s7 = smov 0  }
   0x4   :  { %s486_s8 = smov 0   ;;  %s488_s9 = smov 0  }
   0x5 LB: > { %s503_s10 = sadd.s32 4294967295, %s462_s9   ;;  %s302_s11 = sadd.s32 4294967294, %s462_s9   ;;  %s462_s9 = sphi %s488_s9, %s660_s9   ;;  %s458_s8 = sphi %s486_s8, %s659_s8   ;;  %s454_s7 = sphi %s484_s7, %s658_s7   ;;  %s450_s6 = sphi %s482_s6, %s657_s6  }
   0x6   : > { %s507_s12 = sadd.s32 1, %s462_s9   ;;  %s24_s13 = sadd.s32 1, %s458_s8 }
   0x7   : > { %s21_s14 = ssub.s32 %s462_s9, %s507_s12  ;;  %p31_p0 = scmp.ne.s32.totalorder %s458_s8, %s454_s7 }
   0x8   : > { %p22_p1 = scmp.eq.s32.totalorder %s21_s14, 0  ;;  %p32_p2 = scmp.eq.s32.totalorder %s462_s9, 0 }
   0x9   : > { %p37_p3 = scmp.ne.s32.totalorder %s454_s7, %s450_s6  ;;  %p38_p4 = scmp.eq.s32.totalorder %s503_s10, 0 }
   0xa   : > { %s519_s15 = scalar_select %p22_p1, %s458_s8, %s24_s13  }
   0xb   : > { %p521_p5 = por %p32_p2, %p31_p0  ;;  %p525_p6 = por %p38_p4, %p37_p3 }
   0xc   : > { %p61_p7 = scmp.eq.s32.totalorder %s503_s10, 1  ;;  %p67_p8 = scmp.eq.s32.totalorder %s302_s11, 1 }
   0xd   : > { %s649_s17 = scalar_select %p525_p6, 1, 0 }
   0xe   : > { %p330_p10 = scmp.lt.s32.totalorder %s462_s9, 2  ;;  %p532_p11 = por %p61_p7, %p31_p0 }
   0xf   : > { %p536_p12 = por %p67_p8, %p37_p3  ;;  %s87_s20 = sand.u32 1, %s458_s8  }
  0x10   : > { %s650_s18 = scalar_select %p532_p11, 1, 0 }
  0x11   : > { %s651_s19 = scalar_select %p536_p12, 1, 0 }
  0x12   : > { %s316_s21 = sshll.u32 %s462_s9, 8  ;;  %s305_s22 = sshll.u32 %s87_s20, 4 }
  0x13   : > { %s545_s25 = scalar_lea.hbm %s644_s0, %s316_s21  ;;  %s91_s26 = scalar_lea.vmem [#allocation2], %s305_s22 }
  0x14   : > { %s98_s27 = sshll.u32 %s91_s26, 4  ;;  %p549_p13 = pnand %p330_p10, %p521_p5  ;;  %s553_s27 = int_to_ptr.vmem [resolvable:$true] %s98_s27 }
  0x15   : > { %s555_s29 = scalar_lea.sflag [#allocation3], %s87_s20  ;;  %s370_s30 = scalar_lea.hbm %s545_s25, 256 }
  0x16   : > { %p371_p0 = scmp.ne.s32.totalorder %s545_s25, %s370_s30  ;;  %p372_p1 = pneg %p549_p13 }
  0x17   : > { %s375_s4 = scalar_lea.hbm %s644_s0, 512  ;;  %p376_p4 = scmp.lt.s32.totalorder %s545_s25, %s644_s0 }
  0x18   : > { %p373_p2 = pnand %p372_p1, %p371_p0  ;;  %p377_p5 = scmp.lt.s32.totalorder %s375_s4, %s370_s30 }
  0x1a   : > { %p374_p3 = pneg %p373_p2  ;;  %p378_p7 = por %p377_p5, %p376_p4 }
  0x1c   : > { %p379_p8 = pnand %p378_p7, %p374_p3 }
  0x1e   : > { %382 = shalt.err (!%p379_p8)
}
  0x1f   : > { %s383_s13 = scalar_lea.vmem %s553_s27, 256  ;;  %s464_s14 = smov [#allocation2]  }
  0x20   : > { %p384_p10 = scmp.ne.s32.totalorder %s553_s27, %s383_s13  ;;  %s388_s16 = sshll.u32 %s464_s14, 4  ;;  %s389_s16 = int_to_ptr.vmem [resolvable:$false] %s388_s16 }
  0x21   : > { %s390_s20 = scalar_lea.vmem %s389_s16, 512  ;;  %p391_p2 = scmp.lt.s32.totalorder %s553_s27, %s389_s16 }
  0x22   : > { %p386_p9 = pnand %p384_p10, %p372_p1  ;;  %p392_p12 = scmp.lt.s32.totalorder %s390_s20, %s383_s13 }
  0x24   : > { %p387_p0 = pneg %p386_p9  ;;  %p393_p11 = por %p392_p12, %p391_p2 }
  0x26   : > { %p394_p6 = pnand %p393_p11, %p387_p0 }
  0x28   : > { %397 = shalt.err (!%p394_p6)
}
  0x29   : > { %s465_s21 = smov 128   ;;  %s466_s22 = smov 8  }
  0x2a   : > { %325 = dma.hbm_to_vmem [thread:$0]  (!%p549_p13), %s545_s25, 256, %s553_s27, %s555_s29, %s465_s21, %s465_s21, %s466_s22  }
  0x2b   : > { %p308_p9 = scmp.ge.s32.totalorder %s462_s9, 1  ;;  %p106_p1 = scmp.lt.s32.totalorder %s462_s9, 3 }
  0x2d   : > { %p107_p3 = pnand %p308_p9, %p106_p1 }
  0x2e   : > { %s579_s23 = sand.u32 (!%p107_p3), 1, %s454_s7   ;;  %p653_p6 = scmp.ne.s32.totalorder (!%p107_p3), %s649_s17, 0 }
  0x2f   : > { %110 = sbr.rel (%p107_p3) target bundleno = 209 (0xd1), region = 24  ;;  %s309_s24 = sshll.u32 (!%p107_p3), %s579_s23, 4 }
  0x30   : > { %s113_s26 = scalar_lea.sflag (!%p107_p3), [#allocation3], %s579_s23  ;;  %s116_s30 = scalar_lea.vmem (!%p107_p3), [#allocation2], %s309_s24 }
  0x34   : > { %441 = dma.done.wait (%p653_p6), %s113_s26, 256  }
  0x35   : > { %443 = vsyncadd (%p653_p6), %s113_s26, 4294967040  ;;  %v135_v0 = vld [vmem:[%s116_s30] sm:$0xff]  ;;  %v136_v1 = vld [vmem:[%s116_s30 + $0x8] sm:$0xff]  ;;  %vm139_vm0 = vcmask 1040384   ;;  %vm146_vm1 = vcmask 1046528   ;;  %s467_s25 = smov 1  }
  0x36   : > { %v140_v2 = vrot.slane %v135_v0, 7  ;;  %v147_v3 = vrot.slane %v135_v0, 1  ;;  %v148_v4 = vrot.slane %v136_v1, 1  ;;  %v153_v5 = vadd.f32 %v135_v0, %v135_v0  ;;  %s468_s17 = smov 127   ;;  %s134_s27 = scalar_lea.vmem [#allocation5], %s309_s24 }
  0x37   : > { %v141_v6 = vrot.slane %v136_v1, 7  ;;  %v154_v7 = vadd.f32 %v136_v1, %v136_v1  ;;  %vm176_vm2 = vcmask 7168   ;;  %vm167_vm3 = vcmask 1039360   ;;  %s229_s28 = sshll.u32 %s134_s27, 4  ;;  %s317_s29 = sshll.u32 %s503_s10, 8  ;;  %s596_s28 = int_to_ptr.vmem [resolvable:$true] %s229_s28 }
  0x38   : > { %v145_v8 = vsel %vm139_vm0, 0.0, %v140_v2  ;;  %v149_v9 = vsel %vm146_vm1, %v147_v3, %v148_v4  ;;  %v152_v10 = vsel %vm146_vm1, %v148_v4, 0.0  ;;  %s601_s4 = scalar_lea.hbm %s645_s1, %s317_s29  ;;  %s216_s5 = scalar_lea.sflag [#allocation4], %s579_s23 }
  0x39   : > { %v183_v11 = vsub.f32 %v145_v8, %v149_v9  ;;  %v155_v12 = vadd.f32 %v153_v5, %v145_v8  ;;  %v142_v13 = vsel %vm139_vm0, %v140_v2, %v141_v6  ;;  %s398_s11 = scalar_lea.vmem %s596_s28, 256  ;;  %p654_p12 = scmp.ne.s32.totalorder %s650_s18, 0 }
  0x3a   : > { %v156_v14 = vadd.f32 %v154_v7, %v142_v13  ;;  %v184_v16 = vsub.f32 %v142_v13, %v152_v10  ;;  %p399_p11 = scmp.ne.s32.totalorder %s596_s28, %s398_s11  ;;  %s469_s10 = smov [#allocation5]  }
  0x3b   : > { %187 = vrot.lane.b32.xlu0 %v183_v11, %s467_s25  ;;  %v157_v15 = vadd.f32 %v155_v12, %v149_v9  ;;  %v195_v22 = vadd.f32 %v183_v11, %v183_v11  ;;  %s402_s13 = sshll.u32 %s469_s10, 4  ;;  %s403_s13 = int_to_ptr.vmem [resolvable:$false] %s402_s13 }
  0x3c   : > { %v158_v17 = vadd.f32 %v156_v14, %v152_v10  ;;  %v196_v26 = vadd.f32 %v184_v16, %v184_v16  ;;  %p400_p13 = pnand %p399_p11, %p654_p12  ;;  %s404_s14 = scalar_lea.vmem %s403_s13, 512 }
  0x3d   : > { %161 = vrot.lane.b32.xlu1 %v157_v15, %s468_s17  ;;  %p405_p5 = scmp.lt.s32.totalorder %s596_s28, %s403_s13  ;;  %p406_p7 = scmp.lt.s32.totalorder %s404_s14, %s398_s11 }
  0x3e   : > { %p401_p4 = pneg %p400_p13 }
  0x3f   : > { %189 = vrot.lane.b32.xlu0 %v184_v16, %s467_s25  ;;  %p407_p8 = por %p406_p7, %p405_p5 }
  0x41   : > { %163 = vrot.lane.b32.xlu1 %v158_v17, %s468_s17  ;;  %p408_p10 = pnand %p407_p8, %p401_p4 }
  0x43   : > { %170 = vrot.lane.b32.xlu0 %v157_v15, %s467_s25 }
  0x45   : > { %172 = vrot.lane.b32.xlu1 %v158_v17, %s467_s25 }
  0x47   : > { %199 = vrot.lane.b32.xlu0 %v183_v11, %s468_s17 }
  0x49   : > { %201 = vrot.lane.b32.xlu1 %v184_v16, %s468_s17 }
  0xad   : > { %v188_v18 = vpop.permute.xlu0 %187 }
  0xae   : > { %v193_v24 = vsel %vm176_vm2, 0.0, %v188_v18 }
  0xaf   : > { %v162_v19 = vpop.permute.xlu1 %161  ;;  %v197_v31 = vadd.f32 %v195_v22, %v193_v24 }
  0xb0   : > { %v168_v28 = vsel %vm167_vm3, %v162_v19, 0.0 }
  0xb1   : > { %v190_v20 = vpop.permute.xlu0 %189 }
  0xb2   : > { %v194_v29 = vsel %vm176_vm2, 0.0, %v190_v20 }
  0xb3   : > { %v164_v21 = vpop.permute.xlu1 %163  ;;  %v198_v36 = vadd.f32 %v196_v26, %v194_v29 }
  0xb4   : > { %v169_v34 = vsel %vm167_vm3, %v164_v21, 0.0 }
  0xb5   : > { %v171_v23 = vpop.permute.xlu0 %170 }
  0xb6   : > { %v177_v25 = vsel %vm176_vm2, 0.0, %v171_v23 }
  0xb7   : > { %v173_v27 = vpop.permute.xlu1 %172  ;;  %v179_v32 = vsub.f32 %v168_v28, %v177_v25 }
  0xb8   : > { %v178_v30 = vsel %vm176_vm2, 0.0, %v173_v27 }
  0xb9   : > { %v200_v33 = vpop.permute.xlu0 %199  ;;  %v180_v37 = vsub.f32 %v169_v34, %v178_v30  ;;  %v181_v41 = vand.u32 2147483647, %v179_v32 }
  0xba   : > { %v205_v35 = vsel %vm167_vm3, %v200_v33, 0.0 }
  0xbb   : > { %v207_v38 = vadd.f32 %v205_v35, %v197_v31  ;;  %v202_v39 = vpop.permute.xlu1 %201  ;;  %v182_v44 = vand.u32 2147483647, %v180_v37 }
  0xbc   : > { %v206_v40 = vsel %vm167_vm3, %v202_v39, 0.0 }
  0xbd   : > { %v209_v42 = vand.u32 2147483647, %v207_v38  ;;  %v208_v43 = vadd.f32 %v206_v40, %v198_v36 }
  0xbf   : > { %v211_v45 = vadd.f32 %v209_v42, %v181_v41  ;;  %v210_v46 = vand.u32 2147483647, %v208_v43 }
  0xc1   : > { %213 = vst [vmem:[%s134_s27] sm:$0xff] %v211_v45  ;;  %v212_v47 = vadd.f32 %v210_v46, %v182_v44 }
  0xc3   : > { %214 = vst [vmem:[%s134_s27 + $0x8] sm:$0xff] %v212_v47 }
  0xc4   : > { %411 = shalt.err (!%p408_p10)
}
  0xc5   : > { %s412_s16 = scalar_lea.hbm %s601_s4, 256  ;;  %s416_s22 = scalar_lea.hbm %s645_s1, 512 }
  0xc6   : > { %p413_p0 = scmp.ne.s32.totalorder %s601_s4, %s412_s16  ;;  %p417_p1 = scmp.lt.s32.totalorder %s601_s4, %s645_s1 }
  0xc7   : > { %p418_p3 = scmp.lt.s32.totalorder %s416_s22, %s412_s16 }
  0xc8   : > { %p414_p2 = pnand %p413_p0, %p654_p12 }
  0xc9   : > { %p419_p6 = por %p418_p3, %p417_p1 }
  0xca   : > { %p415_p9 = pneg %p414_p2 }
  0xcc   : > { %p420_p11 = pnand %p419_p6, %p415_p9 }
  0xce   : > { %423 = shalt.err (!%p420_p11)
}
  0xcf   : > { %s470_s30 = smov 128   ;;  %s471_s25 = smov 8  }
  0xd0   : > { %320 = dma.vmem_to_hbm [thread:$0]  (%p654_p12), %s596_s28, 256, %s601_s4, %s216_s5, %s470_s30, %s470_s30, %s471_s25  }
  0xd1 PF: > { %s244_s17 = sand.u32 1, %s450_s6   ;;  %p655_p13 = scmp.ne.s32.totalorder %s651_s19, 0 }
  0xd2   : > { %p656_p4 = scmp.ge.s32.totalorder %s462_s9, 2  ;;  %s245_s27 = scalar_lea.sflag [#allocation4], %s244_s17 }
  0xd4   : > { %p327_p5 = pnand %p656_p4, %p655_p13 }
  0xd6   : > { %p328_p7 = pneg %p327_p5 }
  0xd8   : > { %445 = dma.done.wait (%p328_p7), %s245_s27, 256  }
  0xd9   : > { %447 = vsyncadd (%p328_p7), %s245_s27, 4294967040  ;;  %p14_p8 = scmp.ge.s32.totalorder %s507_s12, 4   ;;  %s657_s6 = smov %s454_s7 }
  0xda   : > { %s658_s7 = smov %s458_s8  ;;  %s659_s8 = smov %s519_s15 }
  0xdb   : > { %s660_s9 = smov %s507_s12  ;;  %16 = sbr.rel (!%p14_p8) target bundleno = 5 (0x5), region = 69 }
  0xe0   :  { %250 = vsyncpa [#allocation3], 1 }
  0xe1   :  { %252 = vsyncpa [#allocation3 + $0x1], 1 }
  0xe2   :  { %253 = vsyncpa [#allocation4], 1 }
  0xe3   :  { %255 = vsyncpa [#allocation4 + $0x1], 1 }

</bundles_post_ra>
